<compile_context>
chip_gen: v7x
topology: tpu7x:2x2x1
jax: 0.10.0
libtpu: 0.0.40
codegen_flags: <defaults>
</compile_context>

<pallas_src>
import jax
import jax.numpy as jnp
from jax.experimental import pallas as pl
from jax.experimental.pallas import tpu as pltpu


def _mixtape_fused_kernel(q_ref, w_ref, o_ref):
    # q_ref: (tile_n, qdim)        -- row tile of the flattened query
    # w_ref: (qdim, tile_nout)     -- lane tile of the fused (all-heads) weight
    # o_ref: (tile_n, tile_nout)   -- tanh(q @ w) tile, lane-dense store
    acc = jnp.dot(q_ref[...], w_ref[...], preferred_element_type=jnp.float32)
    o_ref[...] = jnp.tanh(acc).astype(o_ref.dtype)


def _pick_tile(dim, candidates):
    """Largest candidate that evenly divides `dim`; else the full dim."""
    for c in candidates:
        if c <= dim and dim % c == 0:
            return c
    return dim


def mixtape_forward(query, h_weights, *, compute_dtype=jnp.bfloat16):
    """query: [bz, length, query_dim] ; h_weights: [M, query_dim, mey_dim]
    returns h_qm stacked over heads: [M, bz, length, mey_dim]."""
    bz, length, qdim = query.shape
    M, qdim_w, mdim = h_weights.shape
    assert qdim == qdim_w
    n = bz * length
    nout = M * mdim

    # Flatten rows; fuse all heads into one lane-dense weight slab.
    q2d = query.reshape(n, qdim).astype(compute_dtype)
    w_all = jnp.transpose(h_weights, (1, 0, 2)).reshape(qdim, nout).astype(compute_dtype)

    # Row tile: multiple of 8, big (256-1024) preferred. Out tile: multiple of
    # 256 (v6e/v7x MXU N width) preferred, then 128 (lane width).
    tile_n = _pick_tile(n, (1024, 512, 256, 128, 64, 32, 16, 8))
    tile_nout = _pick_tile(nout, (512, 256, 128))

    in_itemsize = jnp.dtype(compute_dtype).itemsize
    out_itemsize = jnp.dtype(query.dtype).itemsize
    # Double-buffered q / w / out tiles; cap well under v7x's 64 MiB physical VMEM.
    vmem_est = (2 * in_itemsize * (tile_n * qdim + qdim * tile_nout)
                + 2 * out_itemsize * tile_n * tile_nout)
    vmem_limit = int(min(max(4 * vmem_est, 4 << 20), 48 << 20))

    cost = pl.CostEstimate(
        flops=2 * n * qdim * nout,
        transcendentals=n * nout,
        bytes_accessed=in_itemsize * (n * qdim + qdim * nout) + out_itemsize * n * nout,
    )

    out2d = pl.pallas_call(
        _mixtape_fused_kernel,
        out_shape=jax.ShapeDtypeStruct((n, nout), query.dtype),
        grid=(n // tile_n, nout // tile_nout),
        in_specs=[
            pl.BlockSpec((tile_n, qdim), lambda i, j: (i, 0)),      # query row tile
            pl.BlockSpec((qdim, tile_nout), lambda i, j: (0, j)),   # fused weight lane tile
        ],
        out_specs=pl.BlockSpec((tile_n, tile_nout), lambda i, j: (i, j)),
        compiler_params=pltpu.CompilerParams(
            dimension_semantics=("parallel", "parallel"),
            vmem_limit_bytes=vmem_limit,
        ),
        cost_estimate=cost,
    )(q2d, w_all)

    # (n, M*mdim) -> (M, bz, length, mdim)
    return out2d.reshape(n, M, mdim).transpose(1, 0, 2).reshape(M, bz, length, mdim)


def make_params(key, M, query_dim, mey_dim, mix_dim, dtype=jnp.float32):
    """Deterministic synthetic init matching nn.Linear(query_dim, mey_dim, bias=False)
    (uniform +/-1/sqrt(in_features)), stacked over M heads and pre-transposed to
    [M, query_dim, mey_dim].  U_m ([M, query_dim, mix_dim]) is created for shape
    fidelity but unused (see TODO above)."""
    kh, ku = jax.random.split(key)
    bound = 1.0 / (query_dim ** 0.5)
    H = jax.random.uniform(kh, (M, query_dim, mey_dim), dtype, -bound, bound)
    U = jax.random.uniform(ku, (M, query_dim, mix_dim), dtype, -bound, bound)
    return H, U


if __name__ == "__main__":
    # small shapes consistent with the module's forward contract
    bz, length = 2, 8
    query_dim, mey_dim, mix_dim, M = 32, 32, 16, 4

    key = jax.random.PRNGKey(0)
    kq, km, kp = jax.random.split(key, 3)
    query = jax.random.normal(kq, (bz, length, query_dim), jnp.float32)
    mey = jax.random.normal(km, (bz, length, mey_dim), jnp.float32)  # unused by forward

    H, U = make_params(kp, M, query_dim, mey_dim, mix_dim)

    # reference in plain JAX (f32)
    ref = jnp.tanh(jnp.einsum("blq,mqd->mbld", query, H))

    # f32 compute path: tight check
    h_qm_f32 = mixtape_forward(query, H, compute_dtype=jnp.float32)
    jax.block_until_ready(h_qm_f32)
    assert h_qm_f32.shape == (M, bz, length, mey_dim)
    assert jnp.allclose(h_qm_f32, ref, atol=1e-5, rtol=1e-5)

    # default bf16 compute path (MXU-friendly): loose check vs f32 reference
    h_qm = mixtape_forward(query, H)
    jax.block_until_ready(h_qm)
    assert h_qm.shape == (M, bz, length, mey_dim)
    assert jnp.allclose(h_qm, ref, atol=5e-2, rtol=5e-2)

    print("KERNEL_OK")
</pallas_src>

<mosaic_0001>
module attributes {stable_mosaic.version = 11 : i64} {
  func.func @_mixtape_fused_kernel(%arg0: i32, %arg1: i32, %arg2: memref<16x32xf32, #tpu.memory_space<vmem>>, %arg3: memref<32x128xf32, #tpu.memory_space<vmem>>, %arg4: memref<16x128xf32, #tpu.memory_space<vmem>>) attributes {dimension_semantics = [#tpu.dimension_semantics<parallel>, #tpu.dimension_semantics<parallel>], iteration_bounds = array<i64: 1, 1>, scalar_prefetch = 0 : i64, scratch_operands = 0 : i64, tpu.core_type = #tpu.core_type<tc>, window_params = [{transform_indices = @transform_0, window_bounds = array<i64: 16, 32>}, {transform_indices = @transform_1, window_bounds = array<i64: 32, 128>}, {transform_indices = @transform_2, window_bounds = array<i64: 16, 128>}]} {
    %c0 = arith.constant 0 : index
    %c0_0 = arith.constant 0 : index
    %0 = vector.load %arg2[%c0, %c0_0] : memref<16x32xf32, #tpu.memory_space<vmem>>, vector<16x32xf32>
    %c0_1 = arith.constant 0 : index
    %c0_2 = arith.constant 0 : index
    %1 = vector.load %arg3[%c0_1, %c0_2] : memref<32x128xf32, #tpu.memory_space<vmem>>, vector<32x128xf32>
    %cst = arith.constant dense<0.000000e+00> : vector<16x128xf32>
    %2 = tpu.matmul %0, %1, %cst {dimension_numbers = #tpu.dot_dimension_numbers<[1], [0], [0], [1], [0, 0, 1, 1], [], []>} : vector<16x32xf32>, vector<32x128xf32>, vector<16x128xf32> -> vector<16x128xf32>
    %3 = math.tanh %2 : vector<16x128xf32>
    %c0_3 = arith.constant 0 : index
    %c0_4 = arith.constant 0 : index
    %4 = vector.load %arg4[%c0_3, %c0_4] : memref<16x128xf32, #tpu.memory_space<vmem>>, vector<16x128xf32>
    tpu.vector_store %arg4[%c0_3, %c0_4], %3 {strides = array<i32>} : memref<16x128xf32, #tpu.memory_space<vmem>>, vector<16x128xf32>,
    return
  }
  func.func @transform_0(%arg0: i32, %arg1: i32) -> (i32, i32) {
    %c0_i32 = arith.constant 0 : i32
    %c0_i32_0 = arith.constant 0 : i32
    return %arg0, %c0_i32 : i32, i32
  }
  func.func @transform_1(%arg0: i32, %arg1: i32) -> (i32, i32) {
    %c0_i32 = arith.constant 0 : i32
    %c0_i32_0 = arith.constant 0 : i32
    return %c0_i32, %arg1 : i32, i32
  }
  func.func @transform_2(%arg0: i32, %arg1: i32) -> (i32, i32) {
    %c0_i32 = arith.constant 0 : i32
    return %arg0, %arg1 : i32, i32
  }
}

</mosaic_0001>

<bundles_post_ra>
// kernel: tpu_custom_call.1
= control target key start
LH: loop header
LB: loop body
LE: loop exit
PB: predicated region body
PF: predicated region fallthrough
CT: control target
= control target key end

     0   :  { %7 = vsyncpa [#allocation3], 0  ;;  %s323_s0 = inlined_call_operand.hbm [shape: f32[16,32], index: 0, kind: input, shape index: {}]   ;;  %s324_s1 = inlined_call_operand.hbm [shape: f32[32,128], index: 1, kind: input, shape index: {}]   ;;  %s325_s2 = inlined_call_operand.hbm [shape: f32[16,128], index: 2, kind: output, shape index: {}]  }
   0x1   :  { %8 = vsyncpa [#allocation6], 0 }
   0x2   :  { %9 = vsyncpa [#allocation4], 0  ;;  %s258_s9 = smov [#allocation2]   ;;  %s186_s13 = scalar_lea.hbm %s323_s0, 256 }
   0x3   :  { %s15_s10 = sshll.u32 %s258_s9, 4  ;;  %p187_p0 = scmp.ne.s32.totalorder %s323_s0, %s186_s13  ;;  %s16_s10 = int_to_ptr.vmem [resolvable:$true] %s15_s10 }
   0x4   :  { %p190_p1 = scmp.lt.u32.totalorder %s186_s13, %s323_s0 }
   0x6   :  { %p192_p2 = pnand %p190_p1, %p187_p0 }
   0x8   :  { %195 = shalt.err (!%p192_p2)
}
   0x9   :  { %s196_s18 = scalar_lea.vmem %s16_s10, 256  ;;  %p201_p4 = scmp.lt.s32.totalorder %s16_s10, %s16_s10 }
   0xa   :  { %p197_p3 = scmp.ne.s32.totalorder %s16_s10, %s196_s18  ;;  %p202_p5 = scmp.lt.s32.totalorder %s196_s18, %s196_s18 }
   0xc   :  { %p203_p6 = por %p202_p5, %p201_p4 }
   0xe   :  { %p204_p7 = pnand %p203_p6, %p197_p3 }
  0x10   :  { %207 = shalt.err (!%p204_p7)
}
  0x11   :  { %s259_s19 = smov 128   ;;  %s260_s20 = smov 8  }
  0x12   :  { %21 = dma.hbm_to_vmem [thread:$0]  %s323_s0, 256, %s16_s10, [#allocation3], %s259_s19, %s259_s19, %s260_s20  }
  0x13   :  { %s261_s23 = smov [#allocation5]   ;;  %s208_s27 = scalar_lea.hbm %s324_s1, 512 }
  0x14   :  { %s27_s24 = sshll.u32 %s261_s23, 4  ;;  %p209_p8 = scmp.ne.s32.totalorder %s324_s1, %s208_s27  ;;  %s28_s24 = int_to_ptr.vmem [resolvable:$true] %s27_s24 }
  0x15   :  { %p212_p9 = scmp.lt.u32.totalorder %s208_s27, %s324_s1 }
  0x17   :  { %p214_p10 = pnand %p212_p9, %p209_p8 }
  0x19   :  { %217 = shalt.err (!%p214_p10)
}
  0x1a   :  { %s218_s4 = scalar_lea.vmem %s28_s24, 512  ;;  %p223_p12 = scmp.lt.s32.totalorder %s28_s24, %s28_s24 }
  0x1b   :  { %p219_p11 = scmp.ne.s32.totalorder %s28_s24, %s218_s4  ;;  %p224_p13 = scmp.lt.s32.totalorder %s218_s4, %s218_s4 }
  0x1d   :  { %p225_p0 = por %p224_p13, %p223_p12 }
  0x1f   :  { %p226_p1 = pnand %p225_p0, %p219_p11 }
  0x21   :  { %229 = shalt.err (!%p226_p1)
}
  0x22   :  { %33 = dma.hbm_to_vmem [thread:$0]  %s324_s1, 512, %s28_s24, [#allocation6], %s259_s19, %s259_s19, %s260_s20  }
  0x23   :  { %252 = dma.done.wait [#allocation3], 256  }
  0x24   :  { %253 = vsyncadd [#allocation3], 4294967040 }
  0x25   :  { %254 = dma.done.wait [#allocation6], 512  }
  0x26   :  { %255 = vsyncadd [#allocation6], 4294966784  ;;  %vm46_vm0 = vcmask 261120   ;;  %v42_v0 = vld [vmem:[#allocation5] sm:$0xff]  ;;  %v43_v1 = vld [vmem:[#allocation5 + $0x8] sm:$0xff]  ;;  %s262_s1 = smov [#allocation7]  }
  0x27   :  { %v44_v2 = vld [vmem:[#allocation5 + $0x10] sm:$0xff]  ;;  %v169_v3 = vpack.c.bf16 %v43_v1, %v42_v0  ;;  %v45_v4 = vld [vmem:[#allocation5 + $0x18] sm:$0xff]  ;;  %s137_s6 = sshll.u32 %s262_s1, 4  ;;  %s138_s6 = int_to_ptr.vmem [resolvable:$true] %s137_s6 }
  0x28   :  { %v40_v5 = vld [vmem:[#allocation2] sm:$0xff]  ;;  %v173_v6 = vpack.c.bf16 %v45_v4, %v44_v2  ;;  %v41_v7 = vld [vmem:[#allocation2 + $0x8] sm:$0xff]  ;;  %s230_s7 = scalar_lea.vmem %s138_s6, 256  ;;  %p235_p3 = scmp.lt.s32.totalorder %s138_s6, %s138_s6 }
  0x29   :  { %166 = vmatprep.mubr.msk.f32.mxu0 %vm46_vm0, %v40_v5  ;;  %170 = vmatprep.subr.bf16.mxu0 %v169_v3  ;;  %p231_p2 = scmp.ne.s32.totalorder %s138_s6, %s230_s7  ;;  %p236_p4 = scmp.lt.s32.totalorder %s230_s7, %s230_s7 }
  0x2a   :  { %172 = vmatpush3.bf16.msra.mxu0 %v169_v3 }
  0x2b   :  { %174 = vmatprep.subr.bf16.mxu0 %v173_v6  ;;  %p237_p5 = por %p236_p4, %p235_p3 }
  0x2d   :  { %p238_p6 = pnand %p237_p5, %p231_p2 }
  0x2e   :  { %176 = vmatpush3.bf16.msra.mxu0 %v173_v6 }
  0x31   :  { %167 = vmatmul.mubr.msk.f32.vlgmr.msra.gmra.mrb[0].mxu0 %vm46_vm0, %v41_v7 }
 0x104   :  { %v168_v8 = vpop.f32.mrb[0].mxu0 }
 0x105   :  { %182 = vtanh.f32 %v168_v8  ;;  %v119_v9 = vpop.f32.mrb[1].mxu0 }
 0x106   :  { %184 = vtanh.f32 %v119_v9 }
 0x10f   :  { %v183_v10 = vpop.eup %182 }
 0x110   :  { %v185_v11 = vpop.eup %184  ;;  %131 = vst [vmem:[#allocation7 + $0x8] sm:$0xff] %v183_v10 }
 0x111   :  { %130 = vst [vmem:[#allocation7] sm:$0xff] %v185_v11 }
 0x112   :  { %241 = shalt.err (!%p238_p6)
}
 0x113   :  { %s242_s10 = scalar_lea.hbm %s325_s2, 256 }
 0x114   :  { %p243_p7 = scmp.ne.s32.totalorder %s325_s2, %s242_s10  ;;  %p246_p8 = scmp.lt.u32.totalorder %s242_s10, %s325_s2 }
 0x116   :  { %p248_p9 = pnand %p246_p8, %p243_p7 }
 0x118   :  { %251 = shalt.err (!%p248_p9)
}
 0x119   :  { %143 = dma.vmem_to_hbm [thread:$0]  %s138_s6, 256, %s325_s2, [#allocation4], %s259_s19, %s259_s19, %s260_s20  }
 0x11a   :  { %256 = dma.done.wait [#allocation4], 256  }
 0x11b   :  { %257 = vsyncadd [#allocation4], 4294967040 }
 0x11c   :  { %147 = vsyncpa [#allocation3], 1 }
 0x11d   :  { %148 = vsyncpa [#allocation6], 1 }
 0x11e   :  { %149 = vsyncpa [#allocation4], 1 }

</bundles_post_ra>
